<compile_context>
chip_gen: v7x
topology: tpu7x:2x2x1
jax: 0.10.0
libtpu: 0.0.40
codegen_flags: <defaults>
</compile_context>

<pallas_src>
import functools

import jax
import jax.numpy as jnp
from jax.experimental import pallas as pl
from jax.experimental.pallas import tpu as pltpu


def _round_up(x, m):
    return (x + m - 1) // m * m


def _node_classifier_kernel(xT_ref, w1_ref, b1_ref, w2_ref, b2_ref, oT_ref):
    # Shapes per grid step (lane-dense on the node axis):
    #   xT : [IN_P,  TILE_N]   w1 : [HID_P, IN_P]   b1 : [HID_P, 1]
    #   w2 : [OUT,   HID_P]    b2 : [OUT,   1]      oT : [OUT,   TILE_N]
    # fc1: h^T = relu(W1 @ x^T + b1), f32 accumulation on the MXU,
    # bias-add / ReLU on the VPU in f32.
    h = jnp.dot(w1_ref[...], xT_ref[...], preferred_element_type=jnp.float32)
    h = jnp.maximum(h + b1_ref[...], 0.0)
    # fc2: y^T = W2 @ h^T + b2 (activations cast to the MXU operand dtype,
    # accumulation stays f32).
    y = jnp.dot(w2_ref[...], h.astype(w2_ref.dtype),
                preferred_element_type=jnp.float32)
    oT_ref[...] = (y + b2_ref[...]).astype(oT_ref.dtype)


def _node_classifier_pallas(x, w1, b1, w2, b2, *, tile_n, mxu_dtype):
    n, in_dim = x.shape
    hid = w1.shape[0]
    out_dim = w2.shape[0]
    out_dtype = x.dtype
    if mxu_dtype is None:
        mxu_dtype = x.dtype

    in_p = _round_up(in_dim, 8)        # 7 -> 8 (sublane multiple)
    hid_p = _round_up(hid, 8)          # 32 -> 32
    # Don't pad N to a huge default tile when N itself is modest.
    tile_n = max(128, _round_up(min(tile_n, max(n, 1)), 128))
    n_p = _round_up(n, tile_n)

    # One-time layout glue in plain JAX (weights are tiny; x^T is a cheap
    # XLA transpose).  Zero padding in the contraction dims is a no-op.
    xT = jnp.zeros((in_p, n_p), mxu_dtype).at[:in_dim, :n].set(
        x.T.astype(mxu_dtype))
    w1_p = jnp.zeros((hid_p, in_p), mxu_dtype).at[:hid, :in_dim].set(
        w1.astype(mxu_dtype))
    b1_p = jnp.zeros((hid_p, 1), jnp.float32).at[:hid, 0].set(
        b1.astype(jnp.float32))
    w2_p = jnp.zeros((out_dim, hid_p), mxu_dtype).at[:, :hid].set(
        w2.astype(mxu_dtype))
    b2_p = b2.astype(jnp.float32).reshape(out_dim, 1)

    mxu_bytes = jnp.dtype(mxu_dtype).itemsize
    out_bytes = jnp.dtype(out_dtype).itemsize
    cost = pl.CostEstimate(
        flops=2 * n_p * (in_p * hid_p + hid_p * out_dim),
        transcendentals=0,
        bytes_accessed=(in_p * n_p * mxu_bytes          # x^T streamed in
                        + out_dim * n_p * out_bytes     # y^T streamed out
                        + (hid_p * in_p + out_dim * hid_p) * mxu_bytes
                        + (hid_p + out_dim) * 4),       # resident weights/biases
    )

    grid = (n_p // tile_n,)
    yT = pl.pallas_call(
        _node_classifier_kernel,
        out_shape=jax.ShapeDtypeStruct((out_dim, n_p), out_dtype),
        grid=grid,
        in_specs=[
            # x^T tile streams along the node (lane) axis -> double-buffered.
            pl.BlockSpec((in_p, tile_n), lambda i: (0, i)),
            # Weights / biases: constant index_map -> stay resident in VMEM.
            pl.BlockSpec((hid_p, in_p), lambda i: (0, 0)),
            pl.BlockSpec((hid_p, 1), lambda i: (0, 0)),
            pl.BlockSpec((out_dim, hid_p), lambda i: (0, 0)),
            pl.BlockSpec((out_dim, 1), lambda i: (0, 0)),
        ],
        out_specs=pl.BlockSpec((out_dim, tile_n), lambda i: (0, i)),
        compiler_params=pltpu.CompilerParams(
            dimension_semantics=("parallel",)),   # shard tiles across TCs (v7x)
        cost_estimate=cost,
    )(xT, w1_p, b1_p, w2_p, b2_p)

    return yT[:, :n].T.astype(out_dtype)


# Below this node count the ~0.35us/step + launch overhead dwarfs the work;
# raise to ~1024 in production if surrounding XLA fusion is good.
_PALLAS_MIN_NODES = 128


@functools.partial(jax.jit, static_argnames=("tile_n", "use_bf16"))
def node_classifier_forward(x, w1, b1, w2, b2, *, tile_n=1024, use_bf16=False):
    """x: [N, input_dim]; w1: [hidden, input_dim]; b1: [hidden];
    w2: [output, hidden]; b2: [output]  (PyTorch nn.Linear conventions).
    Returns logits [N, output]."""
    n = x.shape[0]
    if n < _PALLAS_MIN_NODES:
        # Tiny problem: let XLA fuse the two dots; Pallas would be pure overhead.
        return (jnp.maximum(x @ w1.T + b1, 0.0) @ w2.T + b2).astype(x.dtype)
    mxu_dtype = jnp.bfloat16 if use_bf16 else None
    return _node_classifier_pallas(x, w1, b1, w2, b2,
                                   tile_n=tile_n, mxu_dtype=mxu_dtype)


def _torch_linear_init(key, out_features, in_features, dtype=jnp.float32):
    """Deterministic init matching nn.Linear default: U(-1/sqrt(in), 1/sqrt(in))."""
    k_w, k_b = jax.random.split(key)
    bound = 1.0 / jnp.sqrt(jnp.float32(in_features))
    w = jax.random.uniform(k_w, (out_features, in_features), dtype,
                           minval=-bound, maxval=bound)
    b = jax.random.uniform(k_b, (out_features,), dtype,
                           minval=-bound, maxval=bound)
    return w, b


if __name__ == "__main__":
    # input_dim = 3 + num_classes, with num_classes = 4 -> 7
    num_classes = 4
    input_dim = 3 + num_classes
    hidden_dim = 32
    output_dim = num_classes
    n_nodes = 256          # small, but enough to exercise the grid (2 tiles of 128)

    key = jax.random.PRNGKey(0)
    k_x, k_fc1, k_fc2 = jax.random.split(key, 3)

    x = jax.random.normal(k_x, (n_nodes, input_dim), jnp.float32)
    w1, b1 = _torch_linear_init(k_fc1, hidden_dim, input_dim)
    w2, b2 = _torch_linear_init(k_fc2, output_dim, hidden_dim)

    # f32 path through the Pallas kernel (tile_n=128 -> 2 grid steps).
    logits = node_classifier_forward(x, w1, b1, w2, b2, tile_n=128)
    jax.block_until_ready(logits)

    # Pure-JAX reference of the same math.
    ref = jnp.maximum(x @ w1.T + b1, 0.0) @ w2.T + b2
    assert logits.shape == (n_nodes, output_dim)
    assert jnp.allclose(logits, ref, atol=1e-5, rtol=1e-5)

    # bf16 MXU-operand path (v6e/v7x bandwidth optimization), looser tolerance.
    logits_bf16 = node_classifier_forward(x, w1, b1, w2, b2,
                                          tile_n=128, use_bf16=True)
    jax.block_until_ready(logits_bf16)
    assert logits_bf16.shape == (n_nodes, output_dim)
    assert jnp.allclose(logits_bf16, ref, atol=5e-2, rtol=5e-2)

    print("KERNEL_OK")
</pallas_src>

<mosaic_0001>
module attributes {stable_mosaic.version = 11 : i64} {
  func.func @_node_classifier_kernel(%arg0: i32, %arg1: memref<8x128xf32, #tpu.memory_space<vmem>>, %arg2: memref<32x8xf32, #tpu.memory_space<vmem>>, %arg3: memref<32x1xf32, #tpu.memory_space<vmem>>, %arg4: memref<4x32xf32, #tpu.memory_space<vmem>>, %arg5: memref<4x1xf32, #tpu.memory_space<vmem>>, %arg6: memref<4x128xf32, #tpu.memory_space<vmem>>) attributes {dimension_semantics = [#tpu.dimension_semantics<parallel>], iteration_bounds = array<i64: 2>, scalar_prefetch = 0 : i64, scratch_operands = 0 : i64, tpu.core_type = #tpu.core_type<tc>, window_params = [{transform_indices = @transform_0, window_bounds = array<i64: 8, 128>}, {pipeline_mode = #tpu.pipeline_mode<synchronous>, transform_indices = @transform_1, window_bounds = array<i64: 32, 8>}, {pipeline_mode = #tpu.pipeline_mode<synchronous>, transform_indices = @transform_2, window_bounds = array<i64: 32, 1>}, {pipeline_mode = #tpu.pipeline_mode<synchronous>, transform_indices = @transform_3, window_bounds = array<i64: 4, 32>}, {pipeline_mode = #tpu.pipeline_mode<synchronous>, transform_indices = @transform_4, window_bounds = array<i64: 4, 1>}, {transform_indices = @transform_5, window_bounds = array<i64: 4, 128>}]} {
    %c0 = arith.constant 0 : index
    %c0_0 = arith.constant 0 : index
    %0 = vector.load %arg2[%c0, %c0_0] : memref<32x8xf32, #tpu.memory_space<vmem>>, vector<32x8xf32>
    %c0_1 = arith.constant 0 : index
    %c0_2 = arith.constant 0 : index
    %1 = vector.load %arg1[%c0_1, %c0_2] : memref<8x128xf32, #tpu.memory_space<vmem>>, vector<8x128xf32>
    %cst = arith.constant dense<0.000000e+00> : vector<32x128xf32>
    %2 = tpu.matmul %0, %1, %cst {dimension_numbers = #tpu.dot_dimension_numbers<[1], [0], [0], [1], [0, 0, 1, 1], [], []>} : vector<32x8xf32>, vector<8x128xf32>, vector<32x128xf32> -> vector<32x128xf32>
    %c0_3 = arith.constant 0 : index
    %c0_4 = arith.constant 0 : index
    %3 = vector.load %arg3[%c0_3, %c0_4] : memref<32x1xf32, #tpu.memory_space<vmem>>, vector<32x1xf32>
    %4 = vector.broadcast %3 : vector<32x1xf32> to vector<32x128xf32>
    %5 = arith.addf %2, %4 : vector<32x128xf32>
    %cst_5 = arith.constant 0.000000e+00 : f32
    %6 = vector.broadcast %cst_5 : f32 to vector<32x128xf32>
    %7 = arith.maximumf %5, %6 : vector<32x128xf32>
    %c0_6 = arith.constant 0 : index
    %c0_7 = arith.constant 0 : index
    %8 = vector.load %arg4[%c0_6, %c0_7] : memref<4x32xf32, #tpu.memory_space<vmem>>, vector<4x32xf32>
    %cst_8 = arith.constant dense<0.000000e+00> : vector<4x128xf32>
    %9 = tpu.matmul %8, %7, %cst_8 {dimension_numbers = #tpu.dot_dimension_numbers<[1], [0], [0], [1], [0, 0, 1, 1], [], []>} : vector<4x32xf32>, vector<32x128xf32>, vector<4x128xf32> -> vector<4x128xf32>
    %c0_9 = arith.constant 0 : index
    %c0_10 = arith.constant 0 : index
    %10 = vector.load %arg5[%c0_9, %c0_10] : memref<4x1xf32, #tpu.memory_space<vmem>>, vector<4x1xf32>
    %11 = vector.broadcast %10 : vector<4x1xf32> to vector<4x128xf32>
    %12 = arith.addf %9, %11 : vector<4x128xf32>
    %c0_11 = arith.constant 0 : index
    %c0_12 = arith.constant 0 : index
    %13 = vector.load %arg6[%c0_11, %c0_12] : memref<4x128xf32, #tpu.memory_space<vmem>>, vector<4x128xf32>
    tpu.vector_store %arg6[%c0_11, %c0_12], %12 {strides = array<i32>} : memref<4x128xf32, #tpu.memory_space<vmem>>, vector<4x128xf32>,
    return
  }
  func.func @transform_0(%arg0: i32) -> (i32, i32) {
    %c0_i32 = arith.constant 0 : i32
    %c0_i32_0 = arith.constant 0 : i32
    return %c0_i32, %arg0 : i32, i32
  }
  func.func @transform_1(%arg0: i32) -> (i32, i32) {
    %c0_i32 = arith.constant 0 : i32
    %c0_i32_0 = arith.constant 0 : i32
    %c0_i32_1 = arith.constant 0 : i32
    return %c0_i32, %c0_i32_0 : i32, i32
  }
  func.func @transform_2(%arg0: i32) -> (i32, i32) {
    %c0_i32 = arith.constant 0 : i32
    %c0_i32_0 = arith.constant 0 : i32
    %c0_i32_1 = arith.constant 0 : i32
    return %c0_i32, %c0_i32_0 : i32, i32
  }
  func.func @transform_3(%arg0: i32) -> (i32, i32) {
    %c0_i32 = arith.constant 0 : i32
    %c0_i32_0 = arith.constant 0 : i32
    %c0_i32_1 = arith.constant 0 : i32
    return %c0_i32, %c0_i32_0 : i32, i32
  }
  func.func @transform_4(%arg0: i32) -> (i32, i32) {
    %c0_i32 = arith.constant 0 : i32
    %c0_i32_0 = arith.constant 0 : i32
    %c0_i32_1 = arith.constant 0 : i32
    return %c0_i32, %c0_i32_0 : i32, i32
  }
  func.func @transform_5(%arg0: i32) -> (i32, i32) {
    %c0_i32 = arith.constant 0 : i32
    %c0_i32_0 = arith.constant 0 : i32
    return %c0_i32, %arg0 : i32, i32
  }
}

</mosaic_0001>

<bundles_post_ra>
// kernel: node_classifier_forward.1
= control target key start
LH: loop header
LB: loop body
LE: loop exit
PB: predicated region body
PF: predicated region fallthrough
CT: control target
= control target key end

     0   :  { %10 = vsyncpa [#allocation3], 0  ;;  %s834_s0 = inlined_call_operand.vmem [shape: f32[8,256], index: 0, kind: input, shape index: {}]   ;;  %s835_s1 = inlined_call_operand.vmem [shape: f32[32,8], index: 1, kind: input, shape index: {}]   ;;  %s836_s2 = inlined_call_operand.vmem [shape: f32[32,1], index: 2, kind: input, shape index: {}]   ;;  %s837_s3 = inlined_call_operand.vmem [shape: f32[4,32], index: 3, kind: input, shape index: {}]   ;;  %s838_s4 = inlined_call_operand.vmem [shape: f32[4,1], index: 4, kind: input, shape index: {}]   ;;  %s839_s5 = inlined_call_operand.hbm [shape: f32[4,256], index: 5, kind: output, shape index: {}]  }
   0x1   :  { %12 = vsyncpa [#allocation3 + $0x1], 0  ;;  %s700_s18 = smov 0   ;;  %s702_s19 = smov 0  }
   0x2   :  { %s704_s20 = smov 0   ;;  %s706_s21 = smov 0  }
   0x3 LB: > { %s721_s22 = sadd.s32 4294967295, %s663_s21   ;;  %s506_s23 = sadd.s32 4294967294, %s663_s21   ;;  %s663_s21 = sphi %s706_s21, %s845_s21   ;;  %s659_s20 = sphi %s704_s20, %s844_s20   ;;  %s655_s19 = sphi %s702_s19, %s843_s19   ;;  %s651_s18 = sphi %s700_s18, %s842_s18  }
   0x4   : > { %s725_s24 = sadd.s32 1, %s663_s21   ;;  %s135_s25 = sadd.s32 1, %s659_s20 }
   0x5   : > { %s132_s26 = ssub.s32 %s663_s21, %s725_s24  ;;  %p145_p0 = scmp.ne.s32.totalorder %s659_s20, %s655_s19 }
   0x6   : > { %p133_p1 = scmp.eq.s32.totalorder %s132_s26, 0  ;;  %p146_p2 = scmp.eq.s32.totalorder %s721_s22, 1 }
   0x7   : > { %p151_p3 = scmp.ne.s32.totalorder %s655_s19, %s651_s18  ;;  %p152_p4 = scmp.eq.s32.totalorder %s506_s23, 1 }
   0x8   : > { %s736_s27 = scalar_select %p133_p1, %s659_s20, %s135_s25  }
   0x9   : > { %p738_p5 = por %p146_p2, %p145_p0  ;;  %p742_p6 = por %p152_p4, %p151_p3 }
   0xa   : > { %p509_p7 = scmp.ge.s32.totalorder %s663_s21, 1  ;;  %p189_p8 = scmp.lt.s32.totalorder %s663_s21, 3 }
   0xc   : > { %p190_p9 = pnand %p509_p7, %p189_p8 }
   0xd   : > { %p216_p10 = scmp.lt.s32.totalorder (!%p190_p9), %s721_s22, 1  ;;  %v220_v0 = vld [vmem:[%s835_s1] sm:$0xff] (!%p190_p9)  ;;  %vm249_vm0 = vcmask (!%p190_p9), 64512   ;;  %v665_v1 = vmov (!%p190_p9), 0   ;;  %v227_v3 = vld [vmem:[%s836_s2 + $0x10] sm:$0xff] (!%p190_p9)  ;;  %v226_v4 = vld [vmem:[%s836_s2 + $0x8] sm:$0xff] (!%p190_p9) }
   0xe   : > { %193 = sbr.rel (%p190_p9) target bundleno = 482 (0x1e2), region = 40  ;;  %533 = vmatprep.mubr.msk.f32.mxu0 (!%p190_p9), %vm249_vm0, %v220_v0  ;;  %599 = vset.pattern.permute.xlu0 (!%p190_p9), %v665_v1  ;;  %v225_v2 = vld [vmem:[%s836_s2] sm:$0xff] (!%p190_p9)  ;;  %v228_v5 = vld [vmem:[%s836_s2 + $0x18] sm:$0xff] (!%p190_p9)  ;;  %v221_v7 = vld [vmem:[%s835_s1 + $0x8] sm:$0xff] (!%p190_p9)  ;;  %v666_v11 = vmov (!%p190_p9), 0.0|0.0   ;;  %vm667_vm1 = vmmov (!%p190_p9), 0  }
   0xf   : > { %231 = vperm.xlu0 (!%p190_p9), %599, %v225_v2   ;;  %600 = vset.pattern.permute.xlu1 (!%p190_p9), %v665_v1  ;;  %v222_v8 = vld [vmem:[%s835_s1 + $0x10] sm:$0xff] (!%p190_p9)  ;;  %v352_v9 = vld [vmem:[%s838_s4] sm:$0xf] (!%p190_p9)  ;;  %v223_v10 = vld [vmem:[%s835_s1 + $0x18] sm:$0xff] (!%p190_p9)  ;;  %v668_v12 = vmov (!%p190_p9), 0.0   ;;  %vm358_vm2 = vcmask (!%p190_p9), 261120  }
  0x10   : > { %241 = vperm.xlu1 (!%p190_p9), %600, %v227_v3   ;;  %550 = vmatprep.subr.bf16.mxu1 (!%p190_p9), %v666_v11  ;;  %v351_v31 = vld [vmem:[%s837_s3] sm:$0xf] (!%p190_p9)  ;;  %s518_s16 = sshll.u32 (!%p190_p9), %s721_s22, 6 }
  0x11   : > { %547 = vmatprep.mubr.msk.f32.mxu1 (!%p190_p9), %vm667_vm1, %v668_v12  ;;  %s792_s30 = scalar_lea.hbm (!%p190_p9), %s839_s5, %s518_s16 }
  0x13   : > { %236 = vperm.xlu0 (!%p190_p9), %599, %v226_v4  }
  0x14   : > { %246 = vperm.xlu1 (!%p190_p9), %600, %v228_v5  }
  0x15   : > { %s217_s9 = scalar_select %p216_p10, %s721_s22, 1 }
  0x16   : > { %s669_s22 = smov [#allocation2]  }
  0x17   : > { %s511_s14 = sshll.u32 %s217_s9, 3  ;;  %355 = vperm.xlu0 %599, %v352_v9   ;;  %s605_s8 = sshll.u32 %s669_s22, 4  ;;  %s606_s8 = int_to_ptr.vmem [resolvable:$false] %s605_s8 }
  0x18   : > { %s219_s25 = scalar_lea.vmem %s834_s0, %s511_s14  ;;  %s213_s14 = sand.u32 1, %s655_s19  }
  0x19   : > { %v224_v6 = vld [vmem:[%s219_s25] sm:$0xff]  ;;  %s510_s15 = sshll.u32 %s213_s14, 2  ;;  %s434_s6 = scalar_lea.sflag [#allocation3], %s213_s14 }
  0x1a   : > { %531 = vmatprep.subr.mxu0 %v224_v6  ;;  %s215_s17 = scalar_lea.vmem [#allocation2], %s510_s15  ;;  %s607_s9 = scalar_lea.vmem %s606_s8, 128 }
  0x1b   : > { %532 = vmatpush3.msra.mxu0 %v224_v6  ;;  %s447_s23 = sshll.u32 %s215_s17, 4  ;;  %s794_s23 = int_to_ptr.vmem [resolvable:$true] %s447_s23 }
  0x1c   : > { %534 = vmatmul.mubr.msk.f32.vlgmr.msra.gmra.mrb[0].mxu0 %vm249_vm0, %v221_v7  ;;  %s601_s7 = scalar_lea.vmem %s794_s23, 64  ;;  %p608_p0 = scmp.lt.s32.totalorder %s794_s23, %s606_s8 }
  0x1d   : > { %536 = vmatprep.mubr.msk.f32.mxu0 %vm249_vm0, %v222_v8  ;;  %p602_p11 = scmp.ne.s32.totalorder %s794_s23, %s601_s7  ;;  %p609_p1 = scmp.lt.s32.totalorder %s607_s9, %s601_s7 }
  0x1f   : > { %p603_p12 = pnand %p602_p11, %p738_p5  ;;  %p610_p2 = por %p609_p1, %p608_p0 }
  0x20   : > { %537 = vmatmul.mubr.msk.f32.gmra.mrb[2].mxu0 %vm249_vm0, %v223_v10 }
  0x21   : > { %p604_p13 = pneg %p603_p12 }
  0x23   : > { %p611_p3 = pnand %p610_p2, %p604_p13 }
  0x8e   : > { %v232_v13 = vpop.permute.xlu0 %231 }
  0x8f   : > { %v242_v14 = vpop.permute.xlu1 %241 }
  0x92   : > { %v237_v15 = vpop.permute.xlu0 %236 }
  0x93   : > { %v247_v21 = vpop.permute.xlu1 %246 }
  0x96   : > { %v356_v32 = vpop.permute.xlu0 %355 }
  0xef   : > { %v535_v16 = vpop.f32.mrb[0].mxu0 }
  0xf0   : > { %v334_v17 = vadd.f32 %v535_v16, %v237_v15  ;;  %v328_v18 = vpop.f32.mrb[1].mxu0 }
  0xf1   : > { %v329_v19 = vadd.f32 %v328_v18, %v232_v13 }
  0xf2   : > { %v348_v20 = vmax.f32 %v334_v17, 0.0 }
  0xf3   : > { %v347_v22 = vmax.f32 %v329_v19, 0.0  ;;  %v538_v23 = vpop.f32.mrb[2].mxu0 }
  0xf4   : > { %v344_v24 = vadd.f32 %v538_v23, %v247_v21  ;;  %v338_v25 = vpop.f32.mrb[3].mxu0 }
  0xf5   : > { %v339_v26 = vadd.f32 %v338_v25, %v242_v14  ;;  %v551_v27 = vpack.c.bf16 %v348_v20, %v347_v22 }
  0xf6   : > { %v350_v28 = vmax.f32 %v344_v24, 0.0 }
  0xf7   : > { %v349_v29 = vmax.f32 %v339_v26, 0.0  ;;  %552 = vmatpush3.bf16.msra.mxu1 %v551_v27 }
  0xf8   : > { %553 = vmatprep.subr.bf16.mxu1 %v666_v11 }
  0xf9   : > { %v554_v30 = vpack.c.bf16 %v350_v28, %v349_v29 }
  0xfb   : > { %555 = vmatpush3.bf16.msra.mxu1 %v554_v30 }
  0xfe   : > { %548 = vmatmul.mubr.msk.f32.vlgmr.msra.gmra.mrb[0].mxu1 %vm358_vm2, %v351_v31 }
 0x1d1   : > { %v428_v33 = vpop.f32.mrb[0].mxu1 }
 0x1d2   : > { %v429_v34 = vadd.f32 %v428_v33, %v356_v32  ;;  %v549_v35 = vpop.f32.mrb[1].mxu1 }
 0x1d4   : > { %432 = vst [vmem:[%s215_s17] sm:$0xf] %v429_v34 }
 0x1d5   : > { %614 = shalt.err (!%p611_p3)
}
 0x1d6   : > { %s615_s10 = scalar_lea.hbm %s792_s30, 64  ;;  %s619_s13 = scalar_lea.hbm %s839_s5, 128 }
 0x1d7   : > { %p616_p4 = scmp.ne.s32.totalorder %s792_s30, %s615_s10  ;;  %p620_p9 = scmp.lt.u32.totalorder %s792_s30, %s839_s5 }
 0x1d8   : > { %p621_p10 = scmp.lt.u32.totalorder %s619_s13, %s615_s10  ;;  %p623_p12 = scmp.lt.u32.totalorder %s615_s10, %s792_s30 }
 0x1d9   : > { %p617_p7 = pnand %p616_p4, %p738_p5 }
 0x1da   : > { %p622_p11 = por %p621_p10, %p620_p9 }
 0x1db   : > { %p618_p8 = pneg %p617_p7 }
 0x1dc   : > { %p624_p13 = por %p623_p12, %p622_p11 }
 0x1de   : > { %p625_p0 = pnand %p624_p13, %p618_p8 }
 0x1e0   : > { %628 = shalt.err (!%p625_p0)
}
 0x1e1   : > { %556 = dma.vmem_to_hbm [thread:$0]  (%p738_p5), %s794_s23, 64, %s792_s30, %s434_s6  }
 0x1e2 PF: > { %p562_p1 = scmp.ge.s32.totalorder %s663_s21, 2  ;;  %s459_s16 = sand.u32 1, %s651_s18  }
 0x1e3   : > { %s460_s17 = scalar_lea.sflag [#allocation3], %s459_s16 }
 0x1e4   : > { %p559_p2 = pnand %p562_p1, %p742_p6 }
 0x1e6   : > { %646 = dma.done.wait (!%p559_p2), %s460_s17, 64  }
 0x1e7   : > { %648 = vsyncadd (!%p559_p2), %s460_s17, 4294967232  ;;  %p15_p3 = scmp.ge.s32.totalorder %s725_s24, 4   ;;  %s842_s18 = smov %s655_s19 }
 0x1e8   : > { %s843_s19 = smov %s659_s20  ;;  %s844_s20 = smov %s736_s27 }
 0x1e9   : > { %s845_s21 = smov %s725_s24  ;;  %17 = sbr.rel (!%p15_p3) target bundleno = 3 (0x3), region = 75 }
 0x1f0   :  { %465 = vsyncpa [#allocation3], 1 }
 0x1f1   :  { %467 = vsyncpa [#allocation3 + $0x1], 1 }

</bundles_post_ra>
